<compile_context>
chip_gen: v6e
topology: v6e:2x2x1
jax: 0.10.0
libtpu: 0.0.40
codegen_flags: <defaults>
</compile_context>

<pallas_src>
import functools

import jax
import jax.numpy as jnp
import numpy as np
from jax.experimental import pallas as pl
from jax.experimental.pallas import tpu as pltpu

LN_EPS = 1e-5
NEG_LARGE = -3.0e38  # finite additive-mask sentinel; exp underflows to exactly 0


def sakt_attn_kernel(params_ref, bias_ref, e_ref, x_ref, attw_ref):
    # Scalar MHA in-projection parameters (Linear(1,1) == scalar affine), read from SMEM.
    wq, bq = params_ref[0], params_ref[3]
    wk, bk = params_ref[1], params_ref[4]

    q = e_ref[...] * wq + bq                      # (TB, S) query projection (question ids)
    k = x_ref[...] * wk + bk                      # (TB, S) key projection   (responses)

    # Attention scores; scale = 1/sqrt(head_dim=1) = 1.  Keep the outer product on the VPU.
    scores = q[:, :, None] * k[:, None, :]        # (TB, S, S)
    masked = scores + bias_ref[...][None, :, :]   # precomputed grid-invariant causal bias

    # Numerically stable softmax over keys; future entries underflow to exactly 0.
    # (The diagonal is never masked, so the per-row max is always finite.)
    m = jnp.max(masked, axis=-1, keepdims=True)
    p = jnp.exp(masked - m)
    denom = jnp.sum(p, axis=-1, keepdims=True)
    r = pl.reciprocal(denom, approx=True)         # EUP vrcp (otherwise-idle slot)
    inv = r * (2.0 - denom * r)                   # one Newton step -> ~1e-7 relative error
    attw_ref[...] = (p * inv).astype(attw_ref.dtype)


def _round_up(n, m):
    return (n + m - 1) // m * m


def _choose_batch_tile(B, S, vmem_budget_bytes=10 * 1024 * 1024):
    """Batch-tile size for the attention-weight kernel.

    Accounts for the double-buffered (TB, S, S) output block plus ~3 tile-sized f32
    elementwise temporaries (scores, scores+bias, exp) -> footprint factor 6 per batch row,
    using vreg-padded extents.  The 10 MiB budget keeps every generation under its scoped
    VMEM default (v5e 16 MiB is the binding one).  Also guarantees >= 2 grid steps whenever
    B allows it, so both v7x TensorCores get work and write-back overlaps compute.
    """
    rows = _round_up(S, 8)
    lanes = _round_up(S, 128)
    per_batch_row = 6 * rows * lanes * 4
    cap = max(1, vmem_budget_bytes // per_batch_row)     # batch rows per tile within budget

    if B < 8:
        # The 2-D input blocks need a sublane dim that is a multiple of 8 or the full batch.
        return B
    desired_tiles = 4 if B >= 32 else 2
    tb = min(cap, max(1, B // desired_tiles))
    tb = (tb // 8) * 8                                   # keep the (8,128) sublane rule
    # For S <= MAX_SEQ=80 even TB=8 is far below budget; max(8, .) is only a safety floor.
    return max(8, tb)


@functools.partial(jax.jit, static_argnames=("return_attention", "attw_dtype"))
def sakt_forward(params, x, question_ids, return_attention=True, attw_dtype=jnp.float32):
    """SAKTModel.forward in eval mode.  (`ts` is unused by the PyTorch module.)"""
    B, S = x.shape

    # Predictions: LayerNorm over a size-1 feature returns exactly its bias, so
    # preds == sigmoid(ln_beta * w_pred + b_pred) -- a data-independent constant.
    # NOTE: this collapse is valid only because embed_dim == 1 in the PyTorch module.
    ln_beta, w_pred, b_pred = params[9], params[14], params[15]
    preds = jnp.full((B, S), jax.nn.sigmoid(ln_beta * w_pred + b_pred), dtype=jnp.float32)

    if not return_attention:
        return preds   # no pallas_call needed: the attention path is dead for preds

    TB = _choose_batch_tile(B, S)
    num_tiles = pl.cdiv(B, TB)   # ragged last tile handled by Pallas edge-block masking

    # Precomputed additive causal bias, hoisted out of the per-step kernel body.
    row = jax.lax.broadcasted_iota(jnp.int32, (S, S), 0)
    col = jax.lax.broadcasted_iota(jnp.int32, (S, S), 1)
    bias = jnp.where(col > row, jnp.float32(NEG_LARGE), jnp.float32(0.0))

    out_bytes = B * S * S * jnp.dtype(attw_dtype).itemsize
    cost = pl.CostEstimate(
        flops=int(8 * B * S * S),
        transcendentals=int(B * S * S),
        bytes_accessed=int(out_bytes + 2 * B * S * 4 + S * S * 4 + 16 * 4),
    )

    attw = pl.pallas_call(
        sakt_attn_kernel,
        out_shape=jax.ShapeDtypeStruct((B, S, S), attw_dtype),
        grid=(num_tiles,),
        in_specs=[
            pl.BlockSpec(memory_space=pltpu.MemorySpace.SMEM),   # 16 scalar params
            pl.BlockSpec((S, S), lambda i: (0, 0)),              # causal bias (grid-invariant)
            pl.BlockSpec((TB, S), lambda i: (i, 0)),             # question_ids (query source)
            pl.BlockSpec((TB, S), lambda i: (i, 0)),             # x (key source)
        ],
        out_specs=pl.BlockSpec((TB, S, S), lambda i: (i, 0, 0)),
        compiler_params=pltpu.CompilerParams(
            dimension_semantics=("parallel",),   # shard batch tiles across both TCs on v7x
        ),
        cost_estimate=cost,
    )(params, bias, question_ids, x)

    return preds, attw


def sakt_reference(params, x, e):
    """Pure-jnp reference mirroring the PyTorch forward literally (eval mode)."""
    wq, wk, wv, bq, bk, bv, w_out, b_out, ln_g, ln_b, w1, b1, w2, b2, wp, bp = [
        params[i] for i in range(16)
    ]
    B, S = x.shape
    q = e * wq + bq
    k = x * wk + bk
    v = x * wv + bv
    scores = q[:, :, None] * k[:, None, :]
    row = np.arange(S)[:, None]
    col = np.arange(S)[None, :]
    scores = jnp.where(jnp.asarray(col > row)[None], -jnp.inf, scores)
    attw = jax.nn.softmax(scores, axis=-1)
    att = jnp.sum(attw * v[:, None, :], axis=-1) * w_out + b_out
    z1 = att + e
    ln1 = (z1 - z1) * jax.lax.rsqrt(jnp.zeros_like(z1) + LN_EPS) * ln_g + ln_b
    h = jnp.maximum(ln1 * w1 + b1, 0.0) * w2 + b2
    z2 = h + ln1
    ln2 = (z2 - z2) * jax.lax.rsqrt(jnp.zeros_like(z2) + LN_EPS) * ln_g + ln_b
    return jax.nn.sigmoid(ln2 * wp + bp), attw


if __name__ == "__main__":
    S = 8  # small demo sequence length (module uses MAX_SEQ=80 in production)

    key = jax.random.PRNGKey(0)
    k_params, k_data = jax.random.split(key)

    # 16 scalar parameters: [wq, wk, wv, bq, bk, bv, w_out, b_out,
    #                        ln_gamma, ln_beta, w_lr1, b_lr1, w_lr2, b_lr2, w_pred, b_pred]
    params = jax.random.normal(k_params, (16,), dtype=jnp.float32) * 0.5
    params = params.at[8].set(1.0).at[9].set(0.0)  # nn.LayerNorm default gamma/beta

    # B=32: multi-step grid (4 tiles of TB=8, exercises megacore/pipelining path)
    # B=2 : tiny single-tile case (matches the original demo shape)
    for B in (32, 2):
        kx, ke, kts = jax.random.split(jax.random.fold_in(k_data, B), 3)
        x = jax.random.normal(kx, (B, S), dtype=jnp.float32)             # responses / features
        question_ids = jax.random.normal(ke, (B, S), dtype=jnp.float32)  # query source
        ts = jax.random.normal(kts, (B, S), dtype=jnp.float32)           # unused (matches PyTorch)

        preds, att_weight = sakt_forward(params, x, question_ids)
        preds_only = sakt_forward(params, x, question_ids, return_attention=False)
        jax.block_until_ready((preds, att_weight, preds_only))

        ref_preds, ref_attw = sakt_reference(params, x, question_ids)
        assert preds.shape == (B, S) and att_weight.shape == (B, S, S)
        np.testing.assert_allclose(np.asarray(preds), np.asarray(ref_preds), rtol=1e-5, atol=1e-5)
        np.testing.assert_allclose(np.asarray(att_weight), np.asarray(ref_attw), rtol=1e-5, atol=1e-5)
        np.testing.assert_allclose(np.asarray(preds_only), np.asarray(preds), rtol=1e-6, atol=1e-6)

    print("KERNEL_OK")
</pallas_src>

<mosaic_0001>
module attributes {stable_mosaic.version = 11 : i64} {
  func.func @sakt_attn_kernel(%arg0: i32, %arg1: memref<16xf32, #tpu.memory_space<smem>>, %arg2: memref<8x8xf32, #tpu.memory_space<vmem>>, %arg3: memref<8x8xf32, #tpu.memory_space<vmem>>, %arg4: memref<8x8xf32, #tpu.memory_space<vmem>>, %arg5: memref<8x8x8xf32, #tpu.memory_space<vmem>>) attributes {dimension_semantics = [#tpu.dimension_semantics<parallel>], iteration_bounds = array<i64: 4>, scalar_prefetch = 0 : i64, scratch_operands = 0 : i64, tpu.core_type = #tpu.core_type<tc>, window_params = [{transform_indices = @transform_0, window_bounds = array<i64: 16>}, {pipeline_mode = #tpu.pipeline_mode<synchronous>, transform_indices = @transform_1, window_bounds = array<i64: 8, 8>}, {transform_indices = @transform_2, window_bounds = array<i64: 8, 8>}, {transform_indices = @transform_3, window_bounds = array<i64: 8, 8>}, {transform_indices = @transform_4, window_bounds = array<i64: 8, 8, 8>}]} {
    %c0 = arith.constant 0 : index
    %0 = memref.load %arg1[%c0] : memref<16xf32, #tpu.memory_space<smem>>
    %c3 = arith.constant 3 : index
    %1 = memref.load %arg1[%c3] : memref<16xf32, #tpu.memory_space<smem>>
    %c1 = arith.constant 1 : index
    %2 = memref.load %arg1[%c1] : memref<16xf32, #tpu.memory_space<smem>>
    %c4 = arith.constant 4 : index
    %3 = memref.load %arg1[%c4] : memref<16xf32, #tpu.memory_space<smem>>
    %c0_0 = arith.constant 0 : index
    %c0_1 = arith.constant 0 : index
    %4 = vector.load %arg3[%c0_0, %c0_1] : memref<8x8xf32, #tpu.memory_space<vmem>>, vector<8x8xf32>
    %5 = vector.broadcast %0 : f32 to vector<8x8xf32>
    %6 = arith.mulf %4, %5 : vector<8x8xf32>
    %7 = vector.broadcast %1 : f32 to vector<8x8xf32>
    %8 = arith.addf %6, %7 : vector<8x8xf32>
    %c0_2 = arith.constant 0 : index
    %c0_3 = arith.constant 0 : index
    %9 = vector.load %arg4[%c0_2, %c0_3] : memref<8x8xf32, #tpu.memory_space<vmem>>, vector<8x8xf32>
    %10 = vector.broadcast %2 : f32 to vector<8x8xf32>
    %11 = arith.mulf %9, %10 : vector<8x8xf32>
    %12 = vector.broadcast %3 : f32 to vector<8x8xf32>
    %13 = arith.addf %11, %12 : vector<8x8xf32>
    %14 = vector.shape_cast %8 : vector<8x8xf32> to vector<8x8x1xf32>
    %15 = vector.shape_cast %13 : vector<8x8xf32> to vector<8x1x8xf32>
    %16 = vector.broadcast %14 : vector<8x8x1xf32> to vector<8x8x8xf32>
    %17 = vector.broadcast %15 : vector<8x1x8xf32> to vector<8x8x8xf32>
    %18 = arith.mulf %16, %17 : vector<8x8x8xf32>
    %c0_4 = arith.constant 0 : index
    %c0_5 = arith.constant 0 : index
    %19 = vector.load %arg2[%c0_4, %c0_5] : memref<8x8xf32, #tpu.memory_space<vmem>>, vector<8x8xf32>
    %20 = vector.shape_cast %19 : vector<8x8xf32> to vector<1x8x8xf32>
    %21 = vector.broadcast %20 : vector<1x8x8xf32> to vector<8x8x8xf32>
    %22 = arith.addf %18, %21 : vector<8x8x8xf32>
    %cst = arith.constant dense<0xFF800000> : vector<8x8xf32>
    %23 = vector.multi_reduction <maximumf>, %22, %cst [2] : vector<8x8x8xf32> to vector<8x8xf32>
    %24 = vector.shape_cast %23 : vector<8x8xf32> to vector<8x8x1xf32>
    %25 = vector.broadcast %24 : vector<8x8x1xf32> to vector<8x8x8xf32>
    %26 = arith.subf %22, %25 : vector<8x8x8xf32>
    %27 = math.exp %26 : vector<8x8x8xf32>
    %cst_6 = arith.constant dense<0.000000e+00> : vector<8x8xf32>
    %28 = vector.multi_reduction <add>, %27, %cst_6 [2] : vector<8x8x8xf32> to vector<8x8xf32>
    %29 = vector.shape_cast %28 : vector<8x8xf32> to vector<8x8x1xf32>
    %30 = tpu.reciprocal %29 {approx = true} : vector<8x8x1xf32> -> vector<8x8x1xf32>
    %31 = arith.mulf %29, %30 : vector<8x8x1xf32>
    %cst_7 = arith.constant 2.000000e+00 : f32
    %32 = vector.broadcast %cst_7 : f32 to vector<8x8x1xf32>
    %33 = arith.subf %32, %31 : vector<8x8x1xf32>
    %34 = arith.mulf %30, %33 : vector<8x8x1xf32>
    %35 = vector.broadcast %34 : vector<8x8x1xf32> to vector<8x8x8xf32>
    %36 = arith.mulf %27, %35 : vector<8x8x8xf32>
    %c0_8 = arith.constant 0 : index
    %c0_9 = arith.constant 0 : index
    %c0_10 = arith.constant 0 : index
    %37 = vector.load %arg5[%c0_8, %c0_9, %c0_10] : memref<8x8x8xf32, #tpu.memory_space<vmem>>, vector<8x8x8xf32>
    tpu.vector_store %arg5[%c0_8, %c0_9, %c0_10], %36 {strides = array<i32>} : memref<8x8x8xf32, #tpu.memory_space<vmem>>, vector<8x8x8xf32>,
    return
  }
  func.func @transform_0(%arg0: i32) -> i32 {
    %c0_i32 = arith.constant 0 : i32
    %c0_i32_0 = arith.constant 0 : i32
    return %c0_i32 : i32
  }
  func.func @transform_1(%arg0: i32) -> (i32, i32) {
    %c0_i32 = arith.constant 0 : i32
    %c0_i32_0 = arith.constant 0 : i32
    %c0_i32_1 = arith.constant 0 : i32
    return %c0_i32, %c0_i32_0 : i32, i32
  }
  func.func @transform_2(%arg0: i32) -> (i32, i32) {
    %c0_i32 = arith.constant 0 : i32
    %c0_i32_0 = arith.constant 0 : i32
    return %arg0, %c0_i32 : i32, i32
  }
  func.func @transform_3(%arg0: i32) -> (i32, i32) {
    %c0_i32 = arith.constant 0 : i32
    %c0_i32_0 = arith.constant 0 : i32
    return %arg0, %c0_i32 : i32, i32
  }
  func.func @transform_4(%arg0: i32) -> (i32, i32, i32) {
    %c0_i32 = arith.constant 0 : i32
    %c0_i32_0 = arith.constant 0 : i32
    %c0_i32_1 = arith.constant 0 : i32
    return %arg0, %c0_i32, %c0_i32_0 : i32, i32, i32
  }
}

</mosaic_0001>

<bundles_post_ra>
// kernel: sakt_forward.1
= control target key start
LH: loop header
LB: loop body
LE: loop exit
PB: predicated region body
PF: predicated region fallthrough
CT: control target
= control target key end

     0   :  { %9 = vsyncpa [#allocation3], 0  ;;  %s727_s15 = smov 0   ;;  %s838_s0 = inlined_call_operand.vmem [shape: f32[16], index: 0, kind: input, shape index: {}]   ;;  %s839_s1 = inlined_call_operand.vmem [shape: f32[8,8], index: 1, kind: input, shape index: {}]   ;;  %s840_s2 = inlined_call_operand.vmem [shape: f32[32,8], index: 2, kind: input, shape index: {}]   ;;  %s841_s3 = inlined_call_operand.vmem [shape: f32[32,8], index: 3, kind: input, shape index: {}]   ;;  %s842_s4 = inlined_call_operand.vmem [shape: f32[32,8,8], index: 4, kind: output, shape index: {}]  }
   0x1 LB: > { %s733_s16 = sadd.s32 4294967295, %s698_s15   ;;  %p607_p0 = scmp.ge.s32.totalorder %s698_s15, 1  ;;  %s698_s15 = sphi %s727_s15, %s15_s15  }
   0x2   : > { %p140_p1 = scmp.lt.s32.totalorder %s698_s15, 5  ;;  %s153_s19 = sshll.u32 %s838_s0, 4  ;;  %s154_s19 = int_to_ptr.vmem [resolvable:$true] %s153_s19 }
   0x3   : > { %p629_p3 = scmp.eq.s32.totalorder %s733_s16, 0  ;;  %s673_s21 = scalar_lea.vmem %s154_s19, 16 }
   0x4   : > { %p740_p2 = pnand %p607_p0, %p140_p1  ;;  %p674_p6 = scmp.ne.s32.totalorder %s154_s19, %s673_s21 }
   0x5   : > { %p681_p10 = scmp.lt.s32.totalorder %s154_s19, %s154_s19  ;;  %p682_p11 = scmp.lt.s32.totalorder %s673_s21, %s673_s21 }
   0x6   : > { %p625_p4 = pneg %p740_p2 }
   0x7   : > { %p683_p12 = por %p682_p11, %p681_p10 }
   0x8   : > { %p626_p5 = pnand %p629_p3, %p625_p4 }
   0xa   : > { %p675_p7 = pneg %p626_p5 }
   0xc   : > { %p676_p8 = pnand %p675_p7, %p674_p6 }
   0xe   : > { %p677_p9 = pneg %p676_p8 }
  0x10   : > { %p684_p13 = pnand %p683_p12, %p677_p9 }
  0x12   : > { %687 = shalt.err (!%p684_p13)
}
  0x13   : > { %s700_s22 = smov [#allocation2]   ;;  %183 = sbr.rel (%p740_p2) target bundleno = 495 (0x1ef), region = 36 }
  0x14   : > { %628 = dma.vmem_to_smem (!%p626_p5), %s154_s19, 16, %s700_s22, [#allocation3]  }
  0x18   : > { %693 = dma.done.wait (%p629_p3), [#allocation3], 16  }
  0x19   : > { %695 = vsyncadd (%p629_p3), [#allocation3], 4294967280 }
  0x1a   : > { %189 = sfence }
  0x1b   : > { %p213_p0 = scmp.lt.s32.totalorder %s733_s16, 3  ;;  %s227_s23 = sld [smem:[#allocation2]]  ;;  %v241_v0 = vlaneseq  ;;  %v701_v2 = vmov 1966171168   ;;  %v395_v55 = vld [vmem:[%s839_s1] sm:$0xff]  ;;  %vm404_vm0 = vcmask 64512  }
  0x1c   : > { %s616_s24 = sld [smem:[#allocation2 + $0x3]]  ;;  %v300_v3 = vunpack.c.l.s4 %v701_v2  ;;  %s614_s11 = sshll.u32 %s733_s16, 3 }
  0x1d   : > { %s214_s25 = scalar_select %p213_p0, %s733_s16, 3  ;;  %v242_v1 = vshrl.u32 %v241_v0, 7 }
  0x1e   : > { %s617_s26 = sld [smem:[#allocation2 + $0x1]]  ;;  %v301_v11 = vunpack.c.0.s8 %v300_v3  ;;  %p222_p1 = scmp.lt.s32.totalorder %s614_s11, 31 }
  0x1f   : > { %s612_s27 = sshll.u32 %s214_s25, 3  ;;  %s618_s8 = sld [smem:[#allocation2 + $0x4]]  ;;  %v763_v8 = vsub.s32 0, %v242_v1  ;;  %v257_v9 = vsub.s32 2, %v242_v1  ;;  %v250_v13 = vsub.s32 1, %v242_v1  ;;  %v264_v14 = vsub.s32 3, %v242_v1 }
  0x20   : > { %s216_s30 = scalar_lea.vmem %s840_s2, %s612_s27  ;;  %s220_s7 = scalar_lea.vmem %s841_s3, %s612_s27  ;;  %v271_v19 = vsub.s32 4, %v242_v1  ;;  %v304_v20 = vsub.s32 %v301_v11, %v242_v1  ;;  %v278_v23 = vsub.s32 5, %v242_v1  ;;  %v285_v30 = vsub.s32 6, %v242_v1 }
  0x21   : > { %v231_v4 = vld [vmem:[%s216_s30] sm:$0xff]  ;;  %v232_v5 = vstv %s227_s23  ;;  %v292_v31 = vsub.s32 7, %v242_v1  ;;  %s845_s11 = smov (!%p222_p1, %s614_s11), 31 }
  0x22   : > { %v233_v6 = vmul.f32 %v232_v5, %v231_v4  ;;  %v234_v7 = vstv %s616_s24  ;;  %v236_v10 = vld [vmem:[%s220_s7] sm:$0xff]  ;;  %s615_s12 = sshll.u32 %s845_s11, 3 }
  0x23   : > { %s812_s16 = scalar_lea.vmem %s842_s4, %s615_s12 }
  0x24   : > { %v235_v12 = vadd.f32 %v234_v7, %v233_v6  ;;  %v237_v15 = vstv %s617_s26 }
  0x25   : > { %v238_v16 = vmul.f32 %v237_v15, %v236_v10  ;;  %v239_v24 = vstv %s618_s8 }
  0x26   : > { %v244_v17 = vrot.slane %v235_v12, %v763_v8  ;;  %v258_v18 = vrot.slane %v235_v12, %v257_v9  ;;  %v251_v21 = vrot.slane %v235_v12, %v250_v13  ;;  %v265_v22 = vrot.slane %v235_v12, %v264_v14 }
  0x27   : > { %v240_v25 = vadd.f32 %v239_v24, %v238_v16  ;;  %v272_v28 = vrot.slane %v235_v12, %v271_v19  ;;  %v279_v29 = vrot.slane %v235_v12, %v278_v23  ;;  %v286_v39 = vrot.slane %v235_v12, %v285_v30 }
  0x28   : > { %246 = vbcast.lane.b32.xlu0 %v244_v17, 256  ;;  %260 = vbcast.lane.b32.xlu1 %v258_v18, 256  ;;  %v293_v40 = vrot.slane %v235_v12, %v292_v31 }
  0x29   : > { %v305_v26 = vrot.slane %v240_v25, %v304_v20  ;;  %v298_v27 = vcombine.high %v240_v25, %v240_v25 }
  0x2b   : > { %v321_v32 = vrot.slane %v305_v26, %v304_v20  ;;  %v313_v33 = vcombine.high %v305_v26, %v305_v26  ;;  %v312_v34 = vrot.slane %v298_v27, %v304_v20 }
  0x2c   : > { %253 = vbcast.lane.b32.xlu0 %v251_v21, 256  ;;  %267 = vbcast.lane.b32.xlu1 %v265_v22, 256 }
  0x2d   : > { %v350_v35 = vrot.slane %v321_v32, %v763_v8  ;;  %v343_v36 = vcombine.high %v321_v32, %v321_v32  ;;  %v335_v37 = vrot.slane %v313_v33, %v304_v20  ;;  %v328_v38 = vrot.slane %v312_v34, %v304_v20 }
  0x2e   : > { %v314_v41 = vcombine.high %v312_v34, %v312_v34 }
  0x2f   : > { %v358_v42 = vrot.slane %v343_v36, %v763_v8  ;;  %v354_v43 = vrot.slane %v335_v37, %v763_v8  ;;  %v345_v44 = vcombine.high %v335_v37, %v335_v37  ;;  %v366_v45 = vrot.slane %v328_v38, %v763_v8 }
  0x30   : > { %274 = vbcast.lane.b32.xlu0 %v272_v28, 256  ;;  %281 = vbcast.lane.b32.xlu1 %v279_v29, 256  ;;  %v342_v46 = vrot.slane %v314_v41, %v304_v20  ;;  %v344_v47 = vcombine.high %v328_v38, %v328_v38 }
  0x31   : > { %v362_v48 = vrot.slane %v345_v44, %v763_v8 }
  0x32   : > { %v370_v49 = vrot.slane %v342_v46, %v763_v8  ;;  %v374_v50 = vrot.slane %v344_v47, %v763_v8  ;;  %v346_v51 = vcombine.high %v342_v46, %v342_v46 }
  0x34   : > { %288 = vbcast.lane.b32.xlu0 %v286_v39, 256  ;;  %295 = vbcast.lane.b32.xlu1 %v293_v40, 256  ;;  %v378_v52 = vrot.slane %v346_v51, %v763_v8 }
  0x9a   : > { %v247_v53 = vpop.permute.xlu0 %246  ;;  %v261_v54 = vpop.permute.xlu1 %260 }
  0x9b   : > { %v387_v56 = vmul.f32 %v350_v35, %v247_v53  ;;  %v389_v57 = vmul.f32 %v358_v42, %v261_v54 }
  0x9d   : > { %v396_v58 = vadd.f32 %v395_v55, %v387_v56  ;;  %v398_v59 = vadd.f32 %v395_v55, %v389_v57 }
  0x9e   : > { %v254_v60 = vpop.permute.xlu0 %253  ;;  %v268_v61 = vpop.permute.xlu1 %267 }
  0x9f   : > { %v388_v62 = vmul.f32 %v354_v43, %v254_v60  ;;  %v405_v63 = vsel %vm404_vm0, %v396_v58, -inf  ;;  %v390_v0 = vmul.f32 %v362_v48, %v268_v61  ;;  %v411_v1 = vsel %vm404_vm0, %v398_v59, -inf }
  0xa0   : > { %406 = vmax.xlane.f32.xlu0 %v405_v63 }
  0xa1   : > { %v397_v2 = vadd.f32 %v395_v55, %v388_v62  ;;  %v399_v3 = vadd.f32 %v395_v55, %v390_v0 }
  0xa2   : > { %v275_v4 = vpop.permute.xlu0 %274  ;;  %v282_v5 = vpop.permute.xlu1 %281 }
  0xa3   : > { %v391_v6 = vmul.f32 %v366_v45, %v275_v4  ;;  %v408_v7 = vsel %vm404_vm0, %v397_v2, -inf  ;;  %v392_v8 = vmul.f32 %v370_v49, %v282_v5  ;;  %v414_v9 = vsel %vm404_vm0, %v399_v3, -inf }
  0xa4   : > { %412 = vmax.xlane.f32.xlu0 %v411_v1  ;;  %409 = vmax.xlane.f32.xlu1 %v408_v7 }
  0xa5   : > { %v400_v10 = vadd.f32 %v395_v55, %v391_v6  ;;  %v401_v11 = vadd.f32 %v395_v55, %v392_v8 }
  0xa6   : > { %v289_v12 = vpop.permute.xlu0 %288  ;;  %v296_v13 = vpop.permute.xlu1 %295 }
  0xa7   : > { %v393_v14 = vmul.f32 %v374_v50, %v289_v12  ;;  %v417_v15 = vsel %vm404_vm0, %v400_v10, -inf  ;;  %v394_v16 = vmul.f32 %v378_v52, %v296_v13  ;;  %v420_v17 = vsel %vm404_vm0, %v401_v11, -inf }
  0xa8   : > { %415 = vmax.xlane.f32.xlu0 %v414_v9  ;;  %418 = vmax.xlane.f32.xlu1 %v417_v15 }
  0xa9   : > { %v402_v18 = vadd.f32 %v395_v55, %v393_v14  ;;  %v403_v19 = vadd.f32 %v395_v55, %v394_v16 }
  0xab   : > { %v423_v20 = vsel %vm404_vm0, %v402_v18, -inf  ;;  %v426_v21 = vsel %vm404_vm0, %v403_v19, -inf }
  0xac   : > { %421 = vmax.xlane.f32.xlu0 %v420_v17  ;;  %424 = vmax.xlane.f32.xlu1 %v423_v20 }
  0xb0   : > { %427 = vmax.xlane.f32.xlu0 %v426_v21 }
 0x129   : > { %v407_v22 = vpop.xlane.xlu0 %406 }
 0x12a   : > { %v429_v23 = vsub.f32 %v396_v58, %v407_v22 }
 0x12c   : > { %v437_v24 = vmul.f32 1.442695, %v429_v23 }
 0x12d   : > { %v410_v25 = vpop.xlane.xlu1 %409  ;;  %v413_v26 = vpop.xlane.xlu0 %412 }
 0x12e   : > { %641 = vpow2.f32 %v437_v24  ;;  %v430_v27 = vsub.f32 %v397_v2, %v410_v25  ;;  %v431_v28 = vsub.f32 %v398_v59, %v413_v26 }
 0x130   : > { %v439_v29 = vmul.f32 1.442695, %v430_v27  ;;  %v441_v30 = vmul.f32 1.442695, %v431_v28 }
 0x131   : > { %v419_v31 = vpop.xlane.xlu1 %418  ;;  %v416_v32 = vpop.xlane.xlu0 %415 }
 0x132   : > { %643 = vpow2.f32 %v439_v29  ;;  %v433_v33 = vsub.f32 %v400_v10, %v419_v31  ;;  %v432_v34 = vsub.f32 %v399_v3, %v416_v32 }
 0x133   : > { %645 = vpow2.f32 %v441_v30 }
 0x134   : > { %v445_v35 = vmul.f32 1.442695, %v433_v33  ;;  %v443_v36 = vmul.f32 1.442695, %v432_v34 }
 0x135   : > { %v425_v37 = vpop.xlane.xlu1 %424  ;;  %v422_v38 = vpop.xlane.xlu0 %421 }
 0x136   : > { %647 = vpow2.f32 %v445_v35  ;;  %v435_v39 = vsub.f32 %v402_v18, %v425_v37  ;;  %v434_v40 = vsub.f32 %v401_v11, %v422_v38 }
 0x137   : > { %649 = vpow2.f32 %v443_v36 }
 0x138   : > { %v449_v41 = vmul.f32 1.442695, %v435_v39  ;;  %v447_v42 = vmul.f32 1.442695, %v434_v40 }
 0x139   : > { %v428_v43 = vpop.xlane.xlu0 %427 }
 0x13a   : > { %651 = vpow2.f32 %v449_v41  ;;  %v436_v44 = vsub.f32 %v403_v19, %v428_v43 }
 0x13b   : > { %v642_v45 = vpop.eup %641  ;;  %653 = vpow2.f32 %v447_v42 }
 0x13c   : > { %v451_v46 = vmul.f32 1.442695, %v436_v44  ;;  %v453_v47 = vsel %vm404_vm0, %v642_v45, 0.0 }
 0x13d   : > { %454 = vadd.xlane.f32.xlu1 %v453_v47 }
 0x13e   : > { %655 = vpow2.f32 %v451_v46 }
 0x13f   : > { %v644_v48 = vpop.eup %643 }
 0x140   : > { %v646_v49 = vpop.eup %645  ;;  %v456_v50 = vsel %vm404_vm0, %v644_v48, 0.0 }
 0x141   : > { %457 = vadd.xlane.f32.xlu0 %v456_v50  ;;  %v459_v51 = vsel %vm404_vm0, %v646_v49, 0.0 }
 0x142   : > { %460 = vadd.xlane.f32.xlu1 %v459_v51 }
 0x143   : > { %v788_v52 = vpop.eup %647 }
 0x144   : > { %v790_v53 = vpop.eup %649  ;;  %v465_v54 = vsel %vm404_vm0, %v788_v52, 0.0 }
 0x145   : > { %v462_v55 = vsel %vm404_vm0, %v790_v53, 0.0 }
 0x146   : > { %466 = vadd.xlane.f32.xlu1 %v465_v54  ;;  %463 = vadd.xlane.f32.xlu0 %v462_v55 }
 0x147   : > { %v796_v56 = vpop.eup %651 }
 0x148   : > { %v798_v57 = vpop.eup %653  ;;  %v471_v58 = vsel %vm404_vm0, %v796_v56, 0.0 }
 0x149   : > { %v468_v59 = vsel %vm404_vm0, %v798_v57, 0.0 }
 0x14a   : > { %472 = vadd.xlane.f32.xlu1 %v471_v58  ;;  %469 = vadd.xlane.f32.xlu0 %v468_v59 }
 0x14b   : > { %v804_v60 = vpop.eup %655 }
 0x14c   : > { %v474_v61 = vsel %vm404_vm0, %v804_v60, 0.0 }
 0x14e   : > { %475 = vadd.xlane.f32.xlu0 %v474_v61 }
 0x1c6   : > { %v455_v62 = vpop.xlane.xlu1 %454 }
 0x1c7   : > { %657 = vrcp.f32 %v455_v62 }
 0x1ca   : > { %v458_v63 = vpop.xlane.xlu0 %457 }
 0x1cb   : > { %v461_v0 = vpop.xlane.xlu1 %460  ;;  %659 = vrcp.f32 %v458_v63 }
 0x1cc   : > { %661 = vrcp.f32 %v461_v0 }
 0x1cf   : > { %v467_v1 = vpop.xlane.xlu1 %466  ;;  %v464_v2 = vpop.xlane.xlu0 %463 }
 0x1d0   : > { %663 = vrcp.f32 %v467_v1 }
 0x1d1   : > { %665 = vrcp.f32 %v464_v2 }
 0x1d3   : > { %v473_v3 = vpop.xlane.xlu1 %472  ;;  %v470_v4 = vpop.xlane.xlu0 %469 }
 0x1d4   : > { %v658_v5 = vpop.eup %657  ;;  %667 = vrcp.f32 %v473_v3 }
 0x1d5   : > { %v485_v6 = vmul.f32 %v658_v5, %v455_v62  ;;  %669 = vrcp.f32 %v470_v4 }
 0x1d7   : > { %v493_v7 = vsub.f32 2.0, %v485_v6  ;;  %v476_v8 = vpop.xlane.xlu0 %475 }
 0x1d8   : > { %v660_v9 = vpop.eup %659  ;;  %671 = vrcp.f32 %v476_v8 }
 0x1d9   : > { %v662_v10 = vpop.eup %661  ;;  %v501_v11 = vmul.f32 %v658_v5, %v493_v7  ;;  %v486_v12 = vmul.f32 %v660_v9, %v458_v63 }
 0x1da   : > { %v487_v13 = vmul.f32 %v662_v10, %v461_v0 }
 0x1db   : > { %v509_v14 = vmul.f32 %v642_v45, %v501_v11  ;;  %v494_v15 = vsub.f32 2.0, %v486_v12 }
 0x1dc   : > { %v495_v16 = vsub.f32 2.0, %v487_v13 }
 0x1dd   : > { %v664_v17 = vpop.eup %663  ;;  %517 = vst.msk [vmem:[%s812_s16] sm:$0xff] %vm404_vm0, %v509_v14  ;;  %v502_v18 = vmul.f32 %v660_v9, %v494_v15 }
 0x1de   : > { %v666_v19 = vpop.eup %665  ;;  %v503_v20 = vmul.f32 %v662_v10, %v495_v16  ;;  %v489_v21 = vmul.f32 %v664_v17, %v467_v1 }
 0x1df   : > { %v510_v22 = vmul.f32 %v644_v48, %v502_v18  ;;  %v488_v23 = vmul.f32 %v666_v19, %v464_v2 }
 0x1e0   : > { %v511_v24 = vmul.f32 %v646_v49, %v503_v20  ;;  %v497_v25 = vsub.f32 2.0, %v489_v21 }
 0x1e1   : > { %v668_v26 = vpop.eup %667  ;;  %518 = vst.msk [vmem:[%s812_s16 + $0x8] sm:$0xff] %vm404_vm0, %v510_v22  ;;  %v496_v27 = vsub.f32 2.0, %v488_v23 }
 0x1e2   : > { %v670_v28 = vpop.eup %669  ;;  %519 = vst.msk [vmem:[%s812_s16 + $0x10] sm:$0xff] %vm404_vm0, %v511_v24  ;;  %v505_v29 = vmul.f32 %v664_v17, %v497_v25  ;;  %v491_v30 = vmul.f32 %v668_v26, %v473_v3 }
 0x1e3   : > { %v504_v31 = vmul.f32 %v666_v19, %v496_v27  ;;  %v490_v32 = vmul.f32 %v670_v28, %v470_v4 }
 0x1e4   : > { %v513_v33 = vmul.f32 %v788_v52, %v505_v29  ;;  %v499_v34 = vsub.f32 2.0, %v491_v30 }
 0x1e5   : > { %v672_v35 = vpop.eup %671  ;;  %v512_v36 = vmul.f32 %v790_v53, %v504_v31  ;;  %v498_v37 = vsub.f32 2.0, %v490_v32 }
 0x1e6   : > { %521 = vst.msk [vmem:[%s812_s16 + $0x20] sm:$0xff] %vm404_vm0, %v513_v33  ;;  %v507_v38 = vmul.f32 %v668_v26, %v499_v34  ;;  %v492_v39 = vmul.f32 %v672_v35, %v476_v8 }
 0x1e7   : > { %520 = vst.msk [vmem:[%s812_s16 + $0x18] sm:$0xff] %vm404_vm0, %v512_v36  ;;  %v506_v40 = vmul.f32 %v670_v28, %v498_v37 }
 0x1e8   : > { %v515_v41 = vmul.f32 %v796_v56, %v507_v38  ;;  %v500_v42 = vsub.f32 2.0, %v492_v39 }
 0x1e9   : > { %v514_v43 = vmul.f32 %v798_v57, %v506_v40 }
 0x1ea   : > { %523 = vst.msk [vmem:[%s812_s16 + $0x30] sm:$0xff] %vm404_vm0, %v515_v41  ;;  %v508_v44 = vmul.f32 %v672_v35, %v500_v42 }
 0x1eb   : > { %522 = vst.msk [vmem:[%s812_s16 + $0x28] sm:$0xff] %vm404_vm0, %v514_v43 }
 0x1ec   : > { %v516_v45 = vmul.f32 %v804_v60, %v508_v44 }
 0x1ee   : > { %524 = vst.msk [vmem:[%s812_s16 + $0x38] sm:$0xff] %vm404_vm0, %v516_v45 }
 0x1ef PF: > { %s15_s15 = sadd.s32 1, %s698_s15  }
 0x1f0   : > { %p12_p2 = scmp.ge.s32.totalorder %s15_s15, 6  }
 0x1f2   :  { %14 = sbr.rel (!%p12_p2) target bundleno = 1 (0x1), region = 74 }
 0x1f7   :  { %547 = vsyncpa [#allocation3], 1 }
 0x1f8   :  { %549 = vsyncpa [#allocation3 + $0x1], 1 }

</bundles_post_ra>
